<compile_context>
chip_gen: v7x
topology: tpu7x:2x2x1
jax: 0.10.0
libtpu: 0.0.40
codegen_flags: <defaults>
</compile_context>

<pallas_src>
import functools

import jax
import jax.numpy as jnp
from jax.experimental import pallas as pl
from jax.experimental.pallas import tpu as pltpu

_SQRT_2_OVER_PI = 0.7978845608028654


def _gelu_tanh(x):
    # TODO(synk): PyTorch nn.GELU() defaults to the exact erf formulation; the
    # tanh approximation (max abs deviation ~1e-3) keeps us on guaranteed
    # Mosaic-lowerable EUP ops (tanh).
    return 0.5 * x * (1.0 + jnp.tanh(_SQRT_2_OVER_PI * (x + 0.044715 * (x * x * x))))


def _transformer_block_kernel(x_ref, g_ref, b_ref, wqkv_ref, wp_ref, w1_ref,
                              w2_ref, o_ref, ctx_ref, *, h, eps):
    bb, t, d = x_ref.shape
    rows = bb * t

    # Flatten the batch block to tall (rows, D) matrices so every projection
    # fills MXU sublanes instead of running short passes.
    x0 = x_ref[...].astype(jnp.float32).reshape(rows, d)

    gamma = g_ref[...].astype(jnp.float32)          # (1, D)
    beta = b_ref[...].astype(jnp.float32)           # (1, D)

    def layernorm(z):                               # f32 in / f32 out
        mu = jnp.mean(z, axis=-1, keepdims=True)
        zc = z - mu
        var = jnp.mean(zc * zc, axis=-1, keepdims=True)
        return zc * jax.lax.rsqrt(var + eps) * gamma + beta

    wqkv = wqkv_ref[...]                            # (D, 3E)   (bf16 by default)
    wp = wp_ref[...]                                # (E, D)
    cdt = wqkv.dtype                                # matmul compute dtype
    e = wqkv.shape[1] // 3
    hd = e // h

    # ---- attention branch -------------------------------------------------
    x1 = layernorm(x0)

    # Fused QKV projection (softmax scale already folded into the Wq columns).
    qkv = jnp.dot(x1.astype(cdt), wqkv, preferred_element_type=jnp.float32)  # (rows, 3E)
    qkv = qkv.astype(cdt).reshape(bb, t, 3 * e)

    # Per-head scores/softmax/context; the per-head context is written into
    # its lane slice of the VMEM scratch so the projection below is a single
    # K=E matmul instead of h K=head_dim matmuls.
    for i in range(h):                              # h is small & static -> unrolls
        qh = qkv[:, :, 0 * e + i * hd: 0 * e + (i + 1) * hd]   # (bb, t, hd)
        kh = qkv[:, :, 1 * e + i * hd: 1 * e + (i + 1) * hd]
        vh = qkv[:, :, 2 * e + i * hd: 2 * e + (i + 1) * hd]
        # Contraction on the last dim of both operands: no materialized k.T.
        s = jnp.einsum("bqd,bkd->bqk", qh, kh,
                       preferred_element_type=jnp.float32)      # (bb, t, t) f32
        s_max = jnp.max(s, axis=-1, keepdims=True)
        p = jnp.exp(s - s_max)
        p = p * pl.reciprocal(jnp.sum(p, axis=-1, keepdims=True), approx=True)
        # TODO(synk): attention dropout (drop1) is identity here (eval mode).
        oh = jnp.einsum("bqk,bkd->bqd", p.astype(cdt), vh,
                        preferred_element_type=jnp.float32)      # (bb, t, hd)
        ctx_ref[:, :, i * hd:(i + 1) * hd] = oh

    # Single output projection over the full contraction E (== concat(heads) @ Wproj).
    ctx = ctx_ref[...].reshape(rows, e)
    attn_out = jnp.dot(ctx.astype(cdt), wp, preferred_element_type=jnp.float32)  # (rows, D)

    # TODO(synk): post-attention dropout is identity (eval mode).
    y = x0 + attn_out                               # first residual (f32)

    # ---- MLP branch --------------------------------------------------------
    z = layernorm(y)
    w1 = w1_ref[...]
    w2 = w2_ref[...]
    hid = jnp.dot(z.astype(w1.dtype), w1, preferred_element_type=jnp.float32)
    hid = _gelu_tanh(hid)                           # f32 elementwise (v5e-safe)
    mlp = jnp.dot(hid.astype(w2.dtype), w2, preferred_element_type=jnp.float32)

    # TODO(synk): post-MLP dropout is identity (eval mode).
    out = y + mlp                                   # second residual
    o_ref[...] = out.reshape(bb, t, d).astype(o_ref.dtype)


def transformer_block(x, gamma, beta, wq, wk, wv, wproj, w1, w2, *, h,
                      eps=1e-5, block_b=None, param_dtype=jnp.bfloat16):
    b, t, d = x.shape
    e = wq.shape[1]
    assert e == 2 * d and e % h == 0
    assert wproj.shape == (e, d)
    hidden = w1.shape[1]
    assert w1.shape == (d, hidden) and w2.shape == (hidden, d)

    # Fold the softmax scale (dim**-0.5, matching the module — NOT head_dim)
    # into Wq, fuse Q/K/V into one weight, and cast weights to the MXU dtype.
    scale = d ** (-0.5)
    wqkv = jnp.concatenate([wq * scale, wk, wv], axis=1).astype(param_dtype)  # (D, 3E)
    wp_c = wproj.astype(param_dtype)
    w1_c = w1.astype(param_dtype)
    w2_c = w2.astype(param_dtype)
    gamma2d = gamma.reshape(1, d).astype(jnp.float32)
    beta2d = beta.reshape(1, d).astype(jnp.float32)

    # Batch block: target ~512 MXU rows per grid step, but keep >= 2 grid
    # steps so both v7x TensorCores get work under dimension_semantics.
    if block_b is None:
        target = max(1, 512 // t)
        cap = max(1, b // 2)
        limit = max(1, min(b, target, cap))
        block_b = 1
        for cand in range(limit, 0, -1):
            if b % cand == 0:
                block_b = cand
                break
    assert b % block_b == 0
    rows = block_b * t

    # Explicit VMEM budget: single-buffered weights + activations + headroom.
    p_item = jnp.dtype(param_dtype).itemsize
    weight_bytes = (d * 3 * e + e * d + d * hidden + hidden * d) * p_item + 2 * d * 4
    act_bytes = (
        4 * block_b * t * d * x.dtype.itemsize     # x in + out, double-buffered
        + 2 * rows * 3 * e * 4                     # qkv (f32 result + cast copy)
        + 2 * block_b * t * t * 4                  # live per-head scores/probs
        + block_b * t * e * 4                      # ctx scratch
        + 2 * rows * hidden * 4                    # MLP hidden + gelu temp
        + 4 * rows * d * 4)                        # residuals / LN temporaries
    vmem_limit = int(min(64 << 20, max(32 << 20, 2 * (weight_bytes + act_bytes))))

    kernel = functools.partial(_transformer_block_kernel, h=h, eps=eps)
    const = pl.Buffered(1)   # constant-index blocks: no double-buffering

    return pl.pallas_call(
        kernel,
        out_shape=jax.ShapeDtypeStruct((b, t, d), x.dtype),
        grid_spec=pltpu.PrefetchScalarGridSpec(
            num_scalar_prefetch=0,
            grid=(b // block_b,),
            in_specs=[
                pl.BlockSpec((block_b, t, d), lambda i: (i, 0, 0)),            # x
                pl.BlockSpec((1, d), lambda i: (0, 0), pipeline_mode=const),   # gamma
                pl.BlockSpec((1, d), lambda i: (0, 0), pipeline_mode=const),   # beta
                pl.BlockSpec((d, 3 * e), lambda i: (0, 0), pipeline_mode=const),   # Wqkv
                pl.BlockSpec((e, d), lambda i: (0, 0), pipeline_mode=const),       # Wproj
                pl.BlockSpec((d, hidden), lambda i: (0, 0), pipeline_mode=const),  # W1
                pl.BlockSpec((hidden, d), lambda i: (0, 0), pipeline_mode=const),  # W2
            ],
            out_specs=pl.BlockSpec((block_b, t, d), lambda i: (i, 0, 0)),
            scratch_shapes=[pltpu.VMEM((block_b, t, e), jnp.float32)],         # head ctx
        ),
        compiler_params=pltpu.CompilerParams(
            dimension_semantics=("parallel",),
            vmem_limit_bytes=vmem_limit),
    )(x, gamma2d, beta2d, wqkv, wp_c, w1_c, w2_c)


def _reference(x, gamma, beta, wq, wk, wv, wproj, w1, w2, *, h, eps=1e-5):
    # Pure-JAX reference mirroring the PyTorch TransformerBlock forward
    # (eval mode; same tanh-GELU approximation as the kernel).
    b, t, d = x.shape
    e = wq.shape[1]
    hd = e // h
    scale = d ** (-0.5)

    def ln(z):
        mu = jnp.mean(z, axis=-1, keepdims=True)
        var = jnp.mean((z - mu) ** 2, axis=-1, keepdims=True)
        return (z - mu) / jnp.sqrt(var + eps) * gamma + beta

    xn = ln(x)
    q = (xn @ wq).reshape(b, t, h, hd).transpose(0, 2, 1, 3)
    k = (xn @ wk).reshape(b, t, h, hd).transpose(0, 2, 1, 3)
    v = (xn @ wv).reshape(b, t, h, hd).transpose(0, 2, 1, 3)
    attn = jax.nn.softmax(jnp.einsum("bhqd,bhkd->bhqk", q, k) * scale, axis=-1)
    a = jnp.einsum("bhqk,bhkd->bhqd", attn, v)
    a = a.transpose(0, 2, 1, 3).reshape(b, t, e) @ wproj
    y = x + a
    z = ln(y)
    mlp = _gelu_tanh(z @ w1) @ w2
    return y + mlp


if __name__ == "__main__":
    # Small shapes consistent with the module: (batch, seq, dim) with heads/expand.
    B, T, DIM, H, EXPAND = 2, 8, 32, 4, 4
    EMBED = 2 * DIM

    key = jax.random.PRNGKey(0)
    kx, kg, kb, kq, kk, kv, kp, k1, k2 = jax.random.split(key, 9)

    x = jax.random.normal(kx, (B, T, DIM), dtype=jnp.float32)
    gamma = 1.0 + 0.1 * jax.random.normal(kg, (DIM,), dtype=jnp.float32)
    beta = 0.1 * jax.random.normal(kb, (DIM,), dtype=jnp.float32)
    wq = 0.05 * jax.random.normal(kq, (DIM, EMBED), dtype=jnp.float32)
    wk = 0.05 * jax.random.normal(kk, (DIM, EMBED), dtype=jnp.float32)
    wv = 0.05 * jax.random.normal(kv, (DIM, EMBED), dtype=jnp.float32)
    wproj = 0.05 * jax.random.normal(kp, (EMBED, DIM), dtype=jnp.float32)
    w1 = 0.05 * jax.random.normal(k1, (DIM, DIM * EXPAND), dtype=jnp.float32)
    w2 = 0.05 * jax.random.normal(k2, (DIM * EXPAND, DIM), dtype=jnp.float32)

    ref = _reference(x, gamma, beta, wq, wk, wv, wproj, w1, w2, h=H)

    # Tight check with f32 weights (isolates kernel math from bf16 rounding).
    out_f32 = transformer_block(x, gamma, beta, wq, wk, wv, wproj, w1, w2,
                                h=H, param_dtype=jnp.float32)
    out_f32 = jax.block_until_ready(out_f32)
    assert out_f32.shape == (B, T, DIM)
    assert jnp.allclose(out_f32, ref, atol=2e-3, rtol=2e-3), (
        "f32 kernel mismatch vs reference: max abs err "
        f"{float(jnp.max(jnp.abs(out_f32 - ref)))}")

    # Default (performance) path: bf16 MXU operands, f32 LN/softmax/GELU math.
    out = transformer_block(x, gamma, beta, wq, wk, wv, wproj, w1, w2, h=H)
    out = jax.block_until_ready(out)
    assert out.shape == (B, T, DIM)
    assert jnp.allclose(out, ref, atol=2.5e-2, rtol=2.5e-2), (
        "bf16 kernel mismatch vs reference: max abs err "
        f"{float(jnp.max(jnp.abs(out - ref)))}")

    print("KERNEL_OK")
</pallas_src>

<mosaic_0001>
module attributes {stable_mosaic.version = 11 : i64} {
  func.func @_transformer_block_kernel(%arg0: i32, %arg1: memref<1x8x32xf32, #tpu.memory_space<vmem>>, %arg2: memref<1x32xf32, #tpu.memory_space<vmem>>, %arg3: memref<1x32xf32, #tpu.memory_space<vmem>>, %arg4: memref<32x192xf32, #tpu.memory_space<vmem>>, %arg5: memref<64x32xf32, #tpu.memory_space<vmem>>, %arg6: memref<32x128xf32, #tpu.memory_space<vmem>>, %arg7: memref<128x32xf32, #tpu.memory_space<vmem>>, %arg8: memref<1x8x32xf32, #tpu.memory_space<vmem>>, %arg9: memref<1x8x64xf32, #tpu.memory_space<vmem>>) attributes {dimension_semantics = [#tpu.dimension_semantics<parallel>], iteration_bounds = array<i64: 2>, scalar_prefetch = 0 : i64, scratch_operands = 1 : i64, tpu.core_type = #tpu.core_type<tc>, window_params = [{transform_indices = @transform_0, window_bounds = array<i64: 1, 8, 32>}, {pipeline_mode = #tpu.pipeline_mode<synchronous>, transform_indices = @transform_1, window_bounds = array<i64: 1, 32>}, {pipeline_mode = #tpu.pipeline_mode<synchronous>, transform_indices = @transform_2, window_bounds = array<i64: 1, 32>}, {pipeline_mode = #tpu.pipeline_mode<synchronous>, transform_indices = @transform_3, window_bounds = array<i64: 32, 192>}, {pipeline_mode = #tpu.pipeline_mode<synchronous>, transform_indices = @transform_4, window_bounds = array<i64: 64, 32>}, {pipeline_mode = #tpu.pipeline_mode<synchronous>, transform_indices = @transform_5, window_bounds = array<i64: 32, 128>}, {pipeline_mode = #tpu.pipeline_mode<synchronous>, transform_indices = @transform_6, window_bounds = array<i64: 128, 32>}, {transform_indices = @transform_7, window_bounds = array<i64: 1, 8, 32>}]} {
    %c0 = arith.constant 0 : index
    %c0_0 = arith.constant 0 : index
    %c0_1 = arith.constant 0 : index
    %0 = vector.load %arg1[%c0, %c0_0, %c0_1] : memref<1x8x32xf32, #tpu.memory_space<vmem>>, vector<1x8x32xf32>
    %1 = vector.shape_cast %0 : vector<1x8x32xf32> to vector<8x32xf32>
    %c0_2 = arith.constant 0 : index
    %c0_3 = arith.constant 0 : index
    %2 = vector.load %arg2[%c0_2, %c0_3] : memref<1x32xf32, #tpu.memory_space<vmem>>, vector<1x32xf32>
    %c0_4 = arith.constant 0 : index
    %c0_5 = arith.constant 0 : index
    %3 = vector.load %arg3[%c0_4, %c0_5] : memref<1x32xf32, #tpu.memory_space<vmem>>, vector<1x32xf32>
    %c0_6 = arith.constant 0 : index
    %c0_7 = arith.constant 0 : index
    %4 = vector.load %arg4[%c0_6, %c0_7] : memref<32x192xf32, #tpu.memory_space<vmem>>, vector<32x192xf32>
    %c0_8 = arith.constant 0 : index
    %c0_9 = arith.constant 0 : index
    %5 = vector.load %arg5[%c0_8, %c0_9] : memref<64x32xf32, #tpu.memory_space<vmem>>, vector<64x32xf32>
    %cst = arith.constant dense<0.000000e+00> : vector<8xf32>
    %6 = vector.multi_reduction <add>, %1, %cst [1] : vector<8x32xf32> to vector<8xf32>
    %7 = vector.shape_cast %6 : vector<8xf32> to vector<8x1xf32>
    %cst_10 = arith.constant 3.200000e+01 : f32
    %8 = vector.broadcast %cst_10 : f32 to vector<8x1xf32>
    %9 = arith.divf %7, %8 : vector<8x1xf32>
    %10 = vector.broadcast %9 : vector<8x1xf32> to vector<8x32xf32>
    %11 = arith.subf %1, %10 : vector<8x32xf32>
    %12 = arith.mulf %11, %11 : vector<8x32xf32>
    %cst_11 = arith.constant dense<0.000000e+00> : vector<8xf32>
    %13 = vector.multi_reduction <add>, %12, %cst_11 [1] : vector<8x32xf32> to vector<8xf32>
    %14 = vector.shape_cast %13 : vector<8xf32> to vector<8x1xf32>
    %cst_12 = arith.constant 3.200000e+01 : f32
    %15 = vector.broadcast %cst_12 : f32 to vector<8x1xf32>
    %16 = arith.divf %14, %15 : vector<8x1xf32>
    %cst_13 = arith.constant 9.99999974E-6 : f32
    %17 = vector.broadcast %cst_13 : f32 to vector<8x1xf32>
    %18 = arith.addf %16, %17 : vector<8x1xf32>
    %19 = math.rsqrt %18 : vector<8x1xf32>
    %20 = vector.broadcast %19 : vector<8x1xf32> to vector<8x32xf32>
    %21 = arith.mulf %11, %20 : vector<8x32xf32>
    %22 = vector.broadcast %2 : vector<1x32xf32> to vector<8x32xf32>
    %23 = arith.mulf %21, %22 : vector<8x32xf32>
    %24 = vector.broadcast %3 : vector<1x32xf32> to vector<8x32xf32>
    %25 = arith.addf %23, %24 : vector<8x32xf32>
    %cst_14 = arith.constant dense<0.000000e+00> : vector<8x192xf32>
    %26 = tpu.matmul %25, %4, %cst_14 {dimension_numbers = #tpu.dot_dimension_numbers<[1], [0], [0], [1], [0, 0, 1, 1], [], []>} : vector<8x32xf32>, vector<32x192xf32>, vector<8x192xf32> -> vector<8x192xf32>
    %27 = vector.shape_cast %26 : vector<8x192xf32> to vector<1x8x192xf32>
    %28 = vector.extract_strided_slice %27 {offsets = [0, 0, 0], sizes = [1, 8, 16], strides = [1, 1, 1]} : vector<1x8x192xf32> to vector<1x8x16xf32>
    %29 = vector.extract_strided_slice %27 {offsets = [0, 0, 64], sizes = [1, 8, 16], strides = [1, 1, 1]} : vector<1x8x192xf32> to vector<1x8x16xf32>
    %30 = vector.extract_strided_slice %27 {offsets = [0, 0, 128], sizes = [1, 8, 16], strides = [1, 1, 1]} : vector<1x8x192xf32> to vector<1x8x16xf32>
    "tpu.trace_start"() <{level = 10 : i32, message = "bqd,bkd->bqk"}> : () -> ()
    %cst_15 = arith.constant dense<0.000000e+00> : vector<1x8x8xf32>
    %31 = tpu.matmul %28, %29, %cst_15 {dimension_numbers = #tpu.dot_dimension_numbers<[2], [2], [1], [1], [0, 0, 0, 1, 1, 1], [0], [0]>} : vector<1x8x16xf32>, vector<1x8x16xf32>, vector<1x8x8xf32> -> vector<1x8x8xf32>
    "tpu.trace_stop"() : () -> ()
    %cst_16 = arith.constant dense<0xFF800000> : vector<1x8xf32>
    %32 = vector.multi_reduction <maximumf>, %31, %cst_16 [2] : vector<1x8x8xf32> to vector<1x8xf32>
    %33 = vector.shape_cast %32 : vector<1x8xf32> to vector<1x8x1xf32>
    %34 = vector.broadcast %33 : vector<1x8x1xf32> to vector<1x8x8xf32>
    %35 = arith.subf %31, %34 : vector<1x8x8xf32>
    %36 = math.exp %35 : vector<1x8x8xf32>
    %cst_17 = arith.constant dense<0.000000e+00> : vector<1x8xf32>
    %37 = vector.multi_reduction <add>, %36, %cst_17 [2] : vector<1x8x8xf32> to vector<1x8xf32>
    %38 = vector.shape_cast %37 : vector<1x8xf32> to vector<1x8x1xf32>
    %39 = tpu.reciprocal %38 {approx = true} : vector<1x8x1xf32> -> vector<1x8x1xf32>
    %40 = vector.broadcast %39 : vector<1x8x1xf32> to vector<1x8x8xf32>
    %41 = arith.mulf %36, %40 : vector<1x8x8xf32>
    "tpu.trace_start"() <{level = 10 : i32, message = "bqk,bkd->bqd"}> : () -> ()
    %cst_18 = arith.constant dense<0.000000e+00> : vector<1x8x16xf32>
    %42 = tpu.matmul %41, %30, %cst_18 {dimension_numbers = #tpu.dot_dimension_numbers<[2], [1], [1], [2], [0, 0, 0, 1, 1, 2], [0], [0]>} : vector<1x8x8xf32>, vector<1x8x16xf32>, vector<1x8x16xf32> -> vector<1x8x16xf32>
    "tpu.trace_stop"() : () -> ()
    %c0_19 = arith.constant 0 : index
    %c0_20 = arith.constant 0 : index
    %c0_21 = arith.constant 0 : index
    %43 = vector.load %arg9[%c0_19, %c0_20, %c0_21] : memref<1x8x64xf32, #tpu.memory_space<vmem>>, vector<1x8x16xf32>
    tpu.vector_store %arg9[%c0_19, %c0_20, %c0_21], %42 {strides = array<i32>} : memref<1x8x64xf32, #tpu.memory_space<vmem>>, vector<1x8x16xf32>,
    %44 = vector.extract_strided_slice %27 {offsets = [0, 0, 16], sizes = [1, 8, 16], strides = [1, 1, 1]} : vector<1x8x192xf32> to vector<1x8x16xf32>
    %45 = vector.extract_strided_slice %27 {offsets = [0, 0, 80], sizes = [1, 8, 16], strides = [1, 1, 1]} : vector<1x8x192xf32> to vector<1x8x16xf32>
    %46 = vector.extract_strided_slice %27 {offsets = [0, 0, 144], sizes = [1, 8, 16], strides = [1, 1, 1]} : vector<1x8x192xf32> to vector<1x8x16xf32>
    "tpu.trace_start"() <{level = 10 : i32, message = "bqd,bkd->bqk"}> : () -> ()
    %cst_22 = arith.constant dense<0.000000e+00> : vector<1x8x8xf32>
    %47 = tpu.matmul %44, %45, %cst_22 {dimension_numbers = #tpu.dot_dimension_numbers<[2], [2], [1], [1], [0, 0, 0, 1, 1, 1], [0], [0]>} : vector<1x8x16xf32>, vector<1x8x16xf32>, vector<1x8x8xf32> -> vector<1x8x8xf32>
    "tpu.trace_stop"() : () -> ()
    %cst_23 = arith.constant dense<0xFF800000> : vector<1x8xf32>
    %48 = vector.multi_reduction <maximumf>, %47, %cst_23 [2] : vector<1x8x8xf32> to vector<1x8xf32>
    %49 = vector.shape_cast %48 : vector<1x8xf32> to vector<1x8x1xf32>
    %50 = vector.broadcast %49 : vector<1x8x1xf32> to vector<1x8x8xf32>
    %51 = arith.subf %47, %50 : vector<1x8x8xf32>
    %52 = math.exp %51 : vector<1x8x8xf32>
    %cst_24 = arith.constant dense<0.000000e+00> : vector<1x8xf32>
    %53 = vector.multi_reduction <add>, %52, %cst_24 [2] : vector<1x8x8xf32> to vector<1x8xf32>
    %54 = vector.shape_cast %53 : vector<1x8xf32> to vector<1x8x1xf32>
    %55 = tpu.reciprocal %54 {approx = true} : vector<1x8x1xf32> -> vector<1x8x1xf32>
    %56 = vector.broadcast %55 : vector<1x8x1xf32> to vector<1x8x8xf32>
    %57 = arith.mulf %52, %56 : vector<1x8x8xf32>
    "tpu.trace_start"() <{level = 10 : i32, message = "bqk,bkd->bqd"}> : () -> ()
    %cst_25 = arith.constant dense<0.000000e+00> : vector<1x8x16xf32>
    %58 = tpu.matmul %57, %46, %cst_25 {dimension_numbers = #tpu.dot_dimension_numbers<[2], [1], [1], [2], [0, 0, 0, 1, 1, 2], [0], [0]>} : vector<1x8x8xf32>, vector<1x8x16xf32>, vector<1x8x16xf32> -> vector<1x8x16xf32>
    "tpu.trace_stop"() : () -> ()
    %c0_26 = arith.constant 0 : index
    %c0_27 = arith.constant 0 : index
    %c16 = arith.constant 16 : index
    %59 = vector.load %arg9[%c0_26, %c0_27, %c16] : memref<1x8x64xf32, #tpu.memory_space<vmem>>, vector<1x8x16xf32>
    tpu.vector_store %arg9[%c0_26, %c0_27, %c16], %58 {strides = array<i32>} : memref<1x8x64xf32, #tpu.memory_space<vmem>>, vector<1x8x16xf32>,
    %60 = vector.extract_strided_slice %27 {offsets = [0, 0, 32], sizes = [1, 8, 16], strides = [1, 1, 1]} : vector<1x8x192xf32> to vector<1x8x16xf32>
    %61 = vector.extract_strided_slice %27 {offsets = [0, 0, 96], sizes = [1, 8, 16], strides = [1, 1, 1]} : vector<1x8x192xf32> to vector<1x8x16xf32>
    %62 = vector.extract_strided_slice %27 {offsets = [0, 0, 160], sizes = [1, 8, 16], strides = [1, 1, 1]} : vector<1x8x192xf32> to vector<1x8x16xf32>
    "tpu.trace_start"() <{level = 10 : i32, message = "bqd,bkd->bqk"}> : () -> ()
    %cst_28 = arith.constant dense<0.000000e+00> : vector<1x8x8xf32>
    %63 = tpu.matmul %60, %61, %cst_28 {dimension_numbers = #tpu.dot_dimension_numbers<[2], [2], [1], [1], [0, 0, 0, 1, 1, 1], [0], [0]>} : vector<1x8x16xf32>, vector<1x8x16xf32>, vector<1x8x8xf32> -> vector<1x8x8xf32>
    "tpu.trace_stop"() : () -> ()
    %cst_29 = arith.constant dense<0xFF800000> : vector<1x8xf32>
    %64 = vector.multi_reduction <maximumf>, %63, %cst_29 [2] : vector<1x8x8xf32> to vector<1x8xf32>
    %65 = vector.shape_cast %64 : vector<1x8xf32> to vector<1x8x1xf32>
    %66 = vector.broadcast %65 : vector<1x8x1xf32> to vector<1x8x8xf32>
    %67 = arith.subf %63, %66 : vector<1x8x8xf32>
    %68 = math.exp %67 : vector<1x8x8xf32>
    %cst_30 = arith.constant dense<0.000000e+00> : vector<1x8xf32>
    %69 = vector.multi_reduction <add>, %68, %cst_30 [2] : vector<1x8x8xf32> to vector<1x8xf32>
    %70 = vector.shape_cast %69 : vector<1x8xf32> to vector<1x8x1xf32>
    %71 = tpu.reciprocal %70 {approx = true} : vector<1x8x1xf32> -> vector<1x8x1xf32>
    %72 = vector.broadcast %71 : vector<1x8x1xf32> to vector<1x8x8xf32>
    %73 = arith.mulf %68, %72 : vector<1x8x8xf32>
    "tpu.trace_start"() <{level = 10 : i32, message = "bqk,bkd->bqd"}> : () -> ()
    %cst_31 = arith.constant dense<0.000000e+00> : vector<1x8x16xf32>
    %74 = tpu.matmul %73, %62, %cst_31 {dimension_numbers = #tpu.dot_dimension_numbers<[2], [1], [1], [2], [0, 0, 0, 1, 1, 2], [0], [0]>} : vector<1x8x8xf32>, vector<1x8x16xf32>, vector<1x8x16xf32> -> vector<1x8x16xf32>
    "tpu.trace_stop"() : () -> ()
    %c0_32 = arith.constant 0 : index
    %c0_33 = arith.constant 0 : index
    %c32 = arith.constant 32 : index
    %75 = vector.load %arg9[%c0_32, %c0_33, %c32] : memref<1x8x64xf32, #tpu.memory_space<vmem>>, vector<1x8x16xf32>
    tpu.vector_store %arg9[%c0_32, %c0_33, %c32], %74 {strides = array<i32>} : memref<1x8x64xf32, #tpu.memory_space<vmem>>, vector<1x8x16xf32>,
    %76 = vector.extract_strided_slice %27 {offsets = [0, 0, 48], sizes = [1, 8, 16], strides = [1, 1, 1]} : vector<1x8x192xf32> to vector<1x8x16xf32>
    %77 = vector.extract_strided_slice %27 {offsets = [0, 0, 112], sizes = [1, 8, 16], strides = [1, 1, 1]} : vector<1x8x192xf32> to vector<1x8x16xf32>
    %78 = vector.extract_strided_slice %27 {offsets = [0, 0, 176], sizes = [1, 8, 16], strides = [1, 1, 1]} : vector<1x8x192xf32> to vector<1x8x16xf32>
    "tpu.trace_start"() <{level = 10 : i32, message = "bqd,bkd->bqk"}> : () -> ()
    %cst_34 = arith.constant dense<0.000000e+00> : vector<1x8x8xf32>
    %79 = tpu.matmul %76, %77, %cst_34 {dimension_numbers = #tpu.dot_dimension_numbers<[2], [2], [1], [1], [0, 0, 0, 1, 1, 1], [0], [0]>} : vector<1x8x16xf32>, vector<1x8x16xf32>, vector<1x8x8xf32> -> vector<1x8x8xf32>
    "tpu.trace_stop"() : () -> ()
    %cst_35 = arith.constant dense<0xFF800000> : vector<1x8xf32>
    %80 = vector.multi_reduction <maximumf>, %79, %cst_35 [2] : vector<1x8x8xf32> to vector<1x8xf32>
    %81 = vector.shape_cast %80 : vector<1x8xf32> to vector<1x8x1xf32>
    %82 = vector.broadcast %81 : vector<1x8x1xf32> to vector<1x8x8xf32>
    %83 = arith.subf %79, %82 : vector<1x8x8xf32>
    %84 = math.exp %83 : vector<1x8x8xf32>
    %cst_36 = arith.constant dense<0.000000e+00> : vector<1x8xf32>
    %85 = vector.multi_reduction <add>, %84, %cst_36 [2] : vector<1x8x8xf32> to vector<1x8xf32>
    %86 = vector.shape_cast %85 : vector<1x8xf32> to vector<1x8x1xf32>
    %87 = tpu.reciprocal %86 {approx = true} : vector<1x8x1xf32> -> vector<1x8x1xf32>
    %88 = vector.broadcast %87 : vector<1x8x1xf32> to vector<1x8x8xf32>
    %89 = arith.mulf %84, %88 : vector<1x8x8xf32>
    "tpu.trace_start"() <{level = 10 : i32, message = "bqk,bkd->bqd"}> : () -> ()
    %cst_37 = arith.constant dense<0.000000e+00> : vector<1x8x16xf32>
    %90 = tpu.matmul %89, %78, %cst_37 {dimension_numbers = #tpu.dot_dimension_numbers<[2], [1], [1], [2], [0, 0, 0, 1, 1, 2], [0], [0]>} : vector<1x8x8xf32>, vector<1x8x16xf32>, vector<1x8x16xf32> -> vector<1x8x16xf32>
    "tpu.trace_stop"() : () -> ()
    %c0_38 = arith.constant 0 : index
    %c0_39 = arith.constant 0 : index
    %c48 = arith.constant 48 : index
    %91 = vector.load %arg9[%c0_38, %c0_39, %c48] : memref<1x8x64xf32, #tpu.memory_space<vmem>>, vector<1x8x16xf32>
    tpu.vector_store %arg9[%c0_38, %c0_39, %c48], %90 {strides = array<i32>} : memref<1x8x64xf32, #tpu.memory_space<vmem>>, vector<1x8x16xf32>,
    %c0_40 = arith.constant 0 : index
    %c0_41 = arith.constant 0 : index
    %c0_42 = arith.constant 0 : index
    %92 = vector.load %arg9[%c0_40, %c0_41, %c0_42] : memref<1x8x64xf32, #tpu.memory_space<vmem>>, vector<1x8x64xf32>
    %93 = vector.shape_cast %92 : vector<1x8x64xf32> to vector<8x64xf32>
    %cst_43 = arith.constant dense<0.000000e+00> : vector<8x32xf32>
    %94 = tpu.matmul %93, %5, %cst_43 {dimension_numbers = #tpu.dot_dimension_numbers<[1], [0], [0], [1], [0, 0, 1, 1], [], []>} : vector<8x64xf32>, vector<64x32xf32>, vector<8x32xf32> -> vector<8x32xf32>
    %95 = arith.addf %1, %94 : vector<8x32xf32>
    %cst_44 = arith.constant dense<0.000000e+00> : vector<8xf32>
    %96 = vector.multi_reduction <add>, %95, %cst_44 [1] : vector<8x32xf32> to vector<8xf32>
    %97 = vector.shape_cast %96 : vector<8xf32> to vector<8x1xf32>
    %cst_45 = arith.constant 3.200000e+01 : f32
    %98 = vector.broadcast %cst_45 : f32 to vector<8x1xf32>
    %99 = arith.divf %97, %98 : vector<8x1xf32>
    %100 = vector.broadcast %99 : vector<8x1xf32> to vector<8x32xf32>
    %101 = arith.subf %95, %100 : vector<8x32xf32>
    %102 = arith.mulf %101, %101 : vector<8x32xf32>
    %cst_46 = arith.constant dense<0.000000e+00> : vector<8xf32>
    %103 = vector.multi_reduction <add>, %102, %cst_46 [1] : vector<8x32xf32> to vector<8xf32>
    %104 = vector.shape_cast %103 : vector<8xf32> to vector<8x1xf32>
    %cst_47 = arith.constant 3.200000e+01 : f32
    %105 = vector.broadcast %cst_47 : f32 to vector<8x1xf32>
    %106 = arith.divf %104, %105 : vector<8x1xf32>
    %cst_48 = arith.constant 9.99999974E-6 : f32
    %107 = vector.broadcast %cst_48 : f32 to vector<8x1xf32>
    %108 = arith.addf %106, %107 : vector<8x1xf32>
    %109 = math.rsqrt %108 : vector<8x1xf32>
    %110 = vector.broadcast %109 : vector<8x1xf32> to vector<8x32xf32>
    %111 = arith.mulf %101, %110 : vector<8x32xf32>
    %112 = vector.broadcast %2 : vector<1x32xf32> to vector<8x32xf32>
    %113 = arith.mulf %111, %112 : vector<8x32xf32>
    %114 = vector.broadcast %3 : vector<1x32xf32> to vector<8x32xf32>
    %115 = arith.addf %113, %114 : vector<8x32xf32>
    %c0_49 = arith.constant 0 : index
    %c0_50 = arith.constant 0 : index
    %116 = vector.load %arg6[%c0_49, %c0_50] : memref<32x128xf32, #tpu.memory_space<vmem>>, vector<32x128xf32>
    %c0_51 = arith.constant 0 : index
    %c0_52 = arith.constant 0 : index
    %117 = vector.load %arg7[%c0_51, %c0_52] : memref<128x32xf32, #tpu.memory_space<vmem>>, vector<128x32xf32>
    %cst_53 = arith.constant dense<0.000000e+00> : vector<8x128xf32>
    %118 = tpu.matmul %115, %116, %cst_53 {dimension_numbers = #tpu.dot_dimension_numbers<[1], [0], [0], [1], [0, 0, 1, 1], [], []>} : vector<8x32xf32>, vector<32x128xf32>, vector<8x128xf32> -> vector<8x128xf32>
    %cst_54 = arith.constant 5.000000e-01 : f32
    %119 = vector.broadcast %cst_54 : f32 to vector<8x128xf32>
    %120 = arith.mulf %119, %118 : vector<8x128xf32>
    %121 = arith.mulf %118, %118 : vector<8x128xf32>
    %122 = arith.mulf %121, %118 : vector<8x128xf32>
    %cst_55 = arith.constant 4.471500e-02 : f32
    %123 = vector.broadcast %cst_55 : f32 to vector<8x128xf32>
    %124 = arith.mulf %123, %122 : vector<8x128xf32>
    %125 = arith.addf %118, %124 : vector<8x128xf32>
    %cst_56 = arith.constant 0.797884583 : f32
    %126 = vector.broadcast %cst_56 : f32 to vector<8x128xf32>
    %127 = arith.mulf %126, %125 : vector<8x128xf32>
    %128 = math.tanh %127 : vector<8x128xf32>
    %cst_57 = arith.constant 1.000000e+00 : f32
    %129 = vector.broadcast %cst_57 : f32 to vector<8x128xf32>
    %130 = arith.addf %129, %128 : vector<8x128xf32>
    %131 = arith.mulf %120, %130 : vector<8x128xf32>
    %cst_58 = arith.constant dense<0.000000e+00> : vector<8x32xf32>
    %132 = tpu.matmul %131, %117, %cst_58 {dimension_numbers = #tpu.dot_dimension_numbers<[1], [0], [0], [1], [0, 0, 1, 1], [], []>} : vector<8x128xf32>, vector<128x32xf32>, vector<8x32xf32> -> vector<8x32xf32>
    %133 = arith.addf %95, %132 : vector<8x32xf32>
    %134 = vector.shape_cast %133 : vector<8x32xf32> to vector<1x8x32xf32>
    %c0_59 = arith.constant 0 : index
    %c0_60 = arith.constant 0 : index
    %c0_61 = arith.constant 0 : index
    %135 = vector.load %arg8[%c0_59, %c0_60, %c0_61] : memref<1x8x32xf32, #tpu.memory_space<vmem>>, vector<1x8x32xf32>
    tpu.vector_store %arg8[%c0_59, %c0_60, %c0_61], %134 {strides = array<i32>} : memref<1x8x32xf32, #tpu.memory_space<vmem>>, vector<1x8x32xf32>,
    return
  }
  func.func @transform_0(%arg0: i32) -> (i32, i32, i32) {
    %c0_i32 = arith.constant 0 : i32
    %c0_i32_0 = arith.constant 0 : i32
    %c0_i32_1 = arith.constant 0 : i32
    return %arg0, %c0_i32, %c0_i32_0 : i32, i32, i32
  }
  func.func @transform_1(%arg0: i32) -> (i32, i32) {
    %c0_i32 = arith.constant 0 : i32
    %c0_i32_0 = arith.constant 0 : i32
    %c0_i32_1 = arith.constant 0 : i32
    return %c0_i32, %c0_i32_0 : i32, i32
  }
  func.func @transform_2(%arg0: i32) -> (i32, i32) {
    %c0_i32 = arith.constant 0 : i32
    %c0_i32_0 = arith.constant 0 : i32
    %c0_i32_1 = arith.constant 0 : i32
    return %c0_i32, %c0_i32_0 : i32, i32
  }
  func.func @transform_3(%arg0: i32) -> (i32, i32) {
    %c0_i32 = arith.constant 0 : i32
    %c0_i32_0 = arith.constant 0 : i32
    %c0_i32_1 = arith.constant 0 : i32
    return %c0_i32, %c0_i32_0 : i32, i32
  }
  func.func @transform_4(%arg0: i32) -> (i32, i32) {
    %c0_i32 = arith.constant 0 : i32
    %c0_i32_0 = arith.constant 0 : i32
    %c0_i32_1 = arith.constant 0 : i32
    return %c0_i32, %c0_i32_0 : i32, i32
  }
  func.func @transform_5(%arg0: i32) -> (i32, i32) {
    %c0_i32 = arith.constant 0 : i32
    %c0_i32_0 = arith.constant 0 : i32
    %c0_i32_1 = arith.constant 0 : i32
    return %c0_i32, %c0_i32_0 : i32, i32
  }
  func.func @transform_6(%arg0: i32) -> (i32, i32) {
    %c0_i32 = arith.constant 0 : i32
    %c0_i32_0 = arith.constant 0 : i32
    %c0_i32_1 = arith.constant 0 : i32
    return %c0_i32, %c0_i32_0 : i32, i32
  }
  func.func @transform_7(%arg0: i32) -> (i32, i32, i32) {
    %c0_i32 = arith.constant 0 : i32
    %c0_i32_0 = arith.constant 0 : i32
    %c0_i32_1 = arith.constant 0 : i32
    return %arg0, %c0_i32, %c0_i32_0 : i32, i32, i32
  }
}

</mosaic_0001>

<bundles_post_ra>
// kernel: tpu_custom_call.1
= control target key start
LH: loop header
LB: loop body
LE: loop exit
PB: predicated region body
PF: predicated region fallthrough
CT: control target
= control target key end

     0   :  { %12 = vsyncpa [#allocation4], 0  ;;  %s2150_s0 = inlined_call_operand.vmem [shape: f32[2,8,32], index: 0, kind: input, shape index: {}]   ;;  %s2151_s1 = inlined_call_operand.vmem [shape: f32[1,32], index: 1, kind: input, shape index: {}]   ;;  %s2152_s2 = inlined_call_operand.vmem [shape: f32[1,32], index: 2, kind: input, shape index: {}]   ;;  %s2153_s3 = inlined_call_operand.vmem [shape: f32[32,192], index: 3, kind: input, shape index: {}]   ;;  %s2154_s4 = inlined_call_operand.vmem [shape: f32[64,32], index: 4, kind: input, shape index: {}]   ;;  %s2155_s5 = inlined_call_operand.vmem [shape: f32[32,128], index: 5, kind: input, shape index: {}]   ;;  %s2156_s6 = inlined_call_operand.vmem [shape: f32[128,32], index: 6, kind: input, shape index: {}]   ;;  %s2157_s7 = inlined_call_operand.hbm [shape: f32[2,8,32], index: 7, kind: output, shape index: {}]  }
   0x1   :  { %14 = vsyncpa [#allocation4 + $0x1], 0  ;;  %s1827_s24 = smov 0   ;;  %s1829_s25 = smov 0  }
   0x2   :  { %s1831_s26 = smov 0   ;;  %s1833_s27 = smov 0  }
   0x3 LB: > { %s1848_s28 = sadd.s32 4294967295, %s1774_s27   ;;  %s1412_s29 = sadd.s32 4294967294, %s1774_s27   ;;  %s1774_s27 = sphi %s1833_s27, %s2163_s27   ;;  %s1770_s26 = sphi %s1831_s26, %s2162_s26   ;;  %s1766_s25 = sphi %s1829_s25, %s2161_s25   ;;  %s1762_s24 = sphi %s1827_s24, %s2160_s24  }
   0x4   : > { %s1852_s30 = sadd.s32 1, %s1774_s27   ;;  %s179_s8 = sadd.s32 1, %s1770_s26 }
   0x5   : > { %s176_s9 = ssub.s32 %s1774_s27, %s1852_s30  ;;  %p189_p0 = scmp.ne.s32.totalorder %s1770_s26, %s1766_s25 }
   0x6   : > { %p177_p1 = scmp.eq.s32.totalorder %s176_s9, 0  ;;  %p190_p2 = scmp.eq.s32.totalorder %s1848_s28, 1 }
   0x7   : > { %p195_p3 = scmp.ne.s32.totalorder %s1766_s25, %s1762_s24  ;;  %p196_p4 = scmp.eq.s32.totalorder %s1412_s29, 1 }
   0x8   : > { %s1863_s10 = scalar_select %p177_p1, %s1770_s26, %s179_s8  }
   0x9   : > { %p1865_p5 = por %p190_p2, %p189_p0  ;;  %p1869_p6 = por %p196_p4, %p195_p3 }
   0xa   : > { %p1415_p7 = scmp.ge.s32.totalorder %s1774_s27, 1  ;;  %p239_p8 = scmp.lt.s32.totalorder %s1774_s27, 3 }
   0xc   : > { %p240_p9 = pnand %p1415_p7, %p239_p8 }
   0xd   : > { %p270_p10 = scmp.lt.s32.totalorder (!%p240_p9), %s1848_s28, 1  ;;  %vm293_vm0 = vcmask (!%p240_p9), 261120   ;;  %v278_v7 = vld [vmem:[%s2153_s3 + $0x8] sm:$0xff] (!%p240_p9)  ;;  %v280_v8 = vld [vmem:[%s2153_s3 + $0x18] sm:$0xff] (!%p240_p9)  ;;  %v277_v9 = vld [vmem:[%s2153_s3] sm:$0xff] (!%p240_p9)  ;;  %v1776_v14 = vmov (!%p240_p9), 0.0  }
   0xe   : > { %243 = sbr.rel (%p240_p9) target bundleno = 2539 (0x9eb), region = 48  ;;  %v1591_v10 = vpack.c.bf16 (!%p240_p9), %v280_v8, %v278_v7  ;;  %v279_v11 = vld [vmem:[%s2153_s3 + $0x10] sm:$0xff] (!%p240_p9)  ;;  %v282_v12 = vld [vmem:[%s2153_s3 + $0x28] sm:$0xff] (!%p240_p9)  ;;  %v284_v13 = vld [vmem:[%s2153_s3 + $0x38] sm:$0xff] (!%p240_p9)  ;;  %389 = vmatprep.mubr.f32.mxu0 (!%p240_p9), %v1776_v14  ;;  %1491 = vmatprep.subr.mxu1 (!%p240_p9), %v1776_v14  ;;  %vm1777_vm1 = vmmov (!%p240_p9), 0   ;;  %s1778_s29 = smov (!%p240_p9), 112  }
   0xf   : > { %v1593_v15 = vpack.c.bf16 (!%p240_p9), %v279_v11, %v277_v9  ;;  %v1595_v16 = vpack.c.bf16 (!%p240_p9), %v284_v13, %v282_v12  ;;  %v281_v17 = vld [vmem:[%s2153_s3 + $0x20] sm:$0xff] (!%p240_p9)  ;;  %v283_v18 = vld [vmem:[%s2153_s3 + $0x30] sm:$0xff] (!%p240_p9)  ;;  %1493 = vmatprep.mubr.msk.f32.mxu1 (!%p240_p9), %vm1777_vm1, %v1776_v14  ;;  %s1779_s8 = smov (!%p240_p9), 64   ;;  %s1780_s9 = smov (!%p240_p9), 48   ;;  %vm399_vm2 = vcmask (!%p240_p9), 130048   ;;  %vm474_vm3 = vcmask (!%p240_p9), 64512  }
  0x10   : > { %1592 = vmatprep.subr.bf16.mxu0 (!%p240_p9), %v1591_v10  ;;  %v1597_v19 = vpack.c.bf16 (!%p240_p9), %v283_v18, %v281_v17  ;;  %v1916_v24 = vld [vmem:[%s2151_s1] ss:$0 sm:$0xff] (!%p240_p9)  ;;  %s1783_s15 = smov (!%p240_p9), 16   ;;  %s1784_s16 = smov (!%p240_p9), 80   ;;  %vm730_vm4 = vcmask (!%p240_p9), 261248   ;;  %vm901_vm5 = vcmask (!%p240_p9), 392448  }
  0x11   : > { %1594 = vmatpush1.bf16.msra.mxu0 (!%p240_p9), %v1593_v15  ;;  %v1921_v26 = vld [vmem:[%s2152_s2] ss:$0 sm:$0xff] (!%p240_p9)  ;;  %vm1072_vm6 = vcmask (!%p240_p9), 523648   ;;  %vm1075_vm7 = vcmask (!%p240_p9), 523264   ;;  %s267_s20 = sand.u32 (!%p240_p9), 1, %s1766_s25  }
  0x12   : > { %1596 = vmatprep.subr.bf16.mxu0 (!%p240_p9), %v1595_v16  ;;  %s1416_s21 = sshll.u32 (!%p240_p9), %s267_s20, 3 }
  0x15   : > { %s271_s13 = scalar_select %p270_p10, %s1848_s28, 1  ;;  %1598 = vmatpush1.bf16.msra.mxu0 %v1597_v19 }
  0x16   : > { %1486 = vmatprep.subr.mxu0 %v1776_v14 }
  0x17   : > { %s1417_s14 = sshll.u32 %s271_s13, 3  ;;  %s1781_s13 = smov 32  }
  0x18   : > { %s273_s17 = scalar_lea.vmem %s2150_s0, %s1417_s14  ;;  %s1782_s14 = smov 96  }
  0x19   : > { %v1880_v0 = vld [vmem:[%s273_s17] sm:$0xff] }
  0x1a   : > { %v294_v1 = vsel %vm293_vm0, %v1880_v0, 0.0 }
  0x1b   : > { %295 = vadd.xlane.f32.xlu0 %v294_v1 }
  0xa8   : > { %v296_v2 = vpop.xlane.xlu0 %295 }
  0xa9   : > { %v298_v3 = vmul.f32 0.03125, %v296_v2 }
  0xab   : > { %v299_v4 = vsub.f32 %v1880_v0, %v298_v3 }
  0xad   : > { %v300_v5 = vmul.f32 %v299_v4, %v299_v4 }
  0xaf   : > { %v301_v6 = vsel %vm293_vm0, %v300_v5, 0.0 }
  0xb0   : > { %302 = vadd.xlane.f32.xlu0 %v301_v6 }
 0x13d   : > { %v303_v20 = vpop.xlane.xlu0 %302 }
 0x13e   : > { %v304_v21 = vmul.f32 0.03125, %v303_v20 }
 0x140   : > { %v305_v22 = vadd.f32 1e-05, %v304_v21 }
 0x142   : > { %1690 = vrsqrt.f32 %v305_v22 }
 0x14c   : > { %v1691_v23 = vpop.eup %1690 }
 0x14d   : > { %v307_v25 = vmul.f32 %v1691_v23, %v299_v4  ;;  %v285_v23 = vld [vmem:[%s2154_s4] sm:$0xff] }
 0x14f   : > { %v314_v27 = vmul.f32 %v1916_v24, %v307_v25  ;;  %v286_v25 = vld [vmem:[%s2154_s4 + $0x8] sm:$0xff] }
 0x151   : > { %v321_v28 = vadd.f32 %v1921_v26, %v314_v27  ;;  %v1600_v27 = vpack.c.bf16 %v286_v25, %v285_v23  ;;  %v1181_v25 = vld [vmem:[%s2156_s6 + $0x60] sm:$0xff] }
 0x153   : > { %1420 = vmatmul.mubr.msk.f32.vlgmr.msra.gmra.mrb[0].mxu0 %vm293_vm0, %v321_v28  ;;  %v287_v28 = vld [vmem:[%s2154_s4 + $0x10] sm:$0xff] }
 0x154   : > { %1488 = vmatprep.mubr.msk.f32.mxu0 %vm1777_vm1, %v1776_v14 }
 0x226   : > { %v391_v29 = vpop.f32.mrb[0].mxu0 }
 0x227   : > { %560 = vrot.lane.b32.xlu0 %v391_v29, %s1778_s29  ;;  %397 = vrot.lane.b32.xlu1 %v391_v29, %s1779_s8  ;;  %v1931_v30 = vpop.f32.mrb[1].mxu0  ;;  %s1340_s8 = scalar_lea.sflag [#allocation4], %s267_s20 }
 0x228   : > { %1492 = vmatpush3.msra.mxu1 %v1931_v30 }
 0x229   : > { %1501 = vmatprep.subr.mxu1 %v1776_v14 }
 0x22b   : > { %562 = vrot.lane.b32.xlu1 %v391_v29, %s1780_s9 }
 0x22f   : > { %734 = vrot.lane.b32.xlu1 %v391_v29, %s1781_s13 }
 0x233   : > { %732 = vrot.lane.b32.xlu1 %v391_v29, %s1782_s14 }
 0x237   : > { %905 = vrot.lane.b32.xlu1 %v391_v29, %s1783_s15 }
 0x23b   : > { %903 = vrot.lane.b32.xlu1 %v391_v29, %s1784_s16 }
 0x299   : > { %v398_v31 = vpop.permute.xlu1 %397  ;;  %v561_v33 = vpop.permute.xlu0 %560 }
 0x29a   : > { %1487 = vmatpush3.xpose.msk.msra.mxu0 %vm399_vm2, %v398_v31 }
 0x29b   : > { %1496 = vmatprep.subr.mxu0 %v1776_v14 }
 0x29d   : > { %1489 = vmatmul.mubr.msk.f32.vlgmr.msra.gmra.mrb[2].mxu0 %vm399_vm2, %v391_v29  ;;  %v563_v32 = vpop.permute.xlu1 %562  ;;  %v288_v29 = vld [vmem:[%s2154_s4 + $0x18] sm:$0xff] }
 0x29e   : > { %1497 = vmatpush3.xpose.msk.msra.mxu0 %vm399_vm2, %v563_v32  ;;  %1498 = vmatprep.mubr.msk.f32.mxu0 %vm1777_vm1, %v1776_v14  ;;  %v1603_v31 = vpack.c.bf16 %v288_v29, %v287_v28  ;;  %v1183_v29 = vld [vmem:[%s2156_s6 + $0x70] sm:$0xff] }
 0x29f   : > { %1506 = vmatprep.subr.mxu0 %v1776_v14 }
 0x2a1   : > { %1499 = vmatmul.mubr.msk.f32.vlgmr.msra.gmra.mrb[4].mxu0 %vm399_vm2, %v561_v33  ;;  %v735_v34 = vpop.permute.xlu1 %734 }
 0x2a2   : > { %1507 = vmatpush3.xpose.msk.msra.mxu0 %vm399_vm2, %v735_v34  ;;  %1508 = vmatprep.mubr.msk.f32.mxu0 %vm1777_vm1, %v1776_v14 }
 0x2a3   : > { %1516 = vmatprep.subr.mxu0 %v1776_v14 }
 0x2a5   : > { %v733_v35 = vpop.permute.xlu1 %732 }
 0x2a6   : > { %1509 = vmatmul.mubr.msk.f32.vlgmr.msra.gmra.mrb[6].mxu0 %vm399_vm2, %v733_v35  ;;  %v289_v35 = vld [vmem:[%s2154_s4 + $0x20] sm:$0xff] }
 0x2a7   : > { %1518 = vmatprep.mubr.msk.f32.mxu0 %vm1777_vm1, %v1776_v14 }
 0x2a9   : > { %v906_v36 = vpop.permute.xlu1 %905 }
 0x2aa   : > { %1517 = vmatpush3.xpose.msk.msra.mxu0 %vm399_vm2, %v906_v36  ;;  %v290_v36 = vld [vmem:[%s2154_s4 + $0x28] sm:$0xff] }
 0x2ad   : > { %v904_v37 = vpop.permute.xlu1 %903 }
 0x2ae   : > { %1519 = vmatmul.mubr.msk.f32.vlgmr.msra.gmra.mrb[8].mxu0 %vm399_vm2, %v904_v37 }
 0x2af   : > { %1542 = vmatprep.mubr.msk.f32.mxu0 %vm1777_vm1, %v1776_v14 }
 0x370   : > { %v470_v38 = vpop.f32.mrb[2].mxu0 }
 0x371   : > { %v1490_v39 = vpop.f32.mrb[3].mxu0  ;;  %v475_v40 = vsel %vm474_vm3, %v470_v38, -inf }
 0x372   : > { %476 = vmax.xlane.f32.xlu1 %v475_v40  ;;  %v291_v39 = vld [vmem:[%s2154_s4 + $0x30] sm:$0xff]  ;;  %v292_v40 = vld [vmem:[%s2154_s4 + $0x38] sm:$0xff] }
 0x374   : > { %v634_v41 = vpop.f32.mrb[4].mxu0 }
 0x375   : > { %v1500_v42 = vpop.f32.mrb[5].mxu0  ;;  %v638_v43 = vsel %vm474_vm3, %v634_v41, -inf }
 0x376   : > { %639 = vmax.xlane.f32.xlu0 %v638_v43 }
 0x379   : > { %v806_v44 = vpop.f32.mrb[6].mxu0 }
 0x37a   : > { %v1510_v45 = vpop.f32.mrb[7].mxu0  ;;  %v810_v46 = vsel %vm474_vm3, %v806_v44, -inf }
 0x37b   : > { %811 = vmax.xlane.f32.xlu1 %v810_v46 }
 0x381   : > { %v977_v47 = vpop.f32.mrb[8].mxu0 }
 0x382   : > { %v1520_v48 = vpop.f32.mrb[9].mxu0  ;;  %v981_v49 = vsel %vm474_vm3, %v977_v47, -inf }
 0x383   : > { %982 = vmax.xlane.f32.xlu0 %v981_v49 }
 0x38c   : > { %650 = vrot.lane.b32.xlu1 %v1931_v30, %s1778_s29 }
 0x3ff   : > { %v477_v50 = vpop.xlane.xlu1 %476 }
 0x400   : > { %v478_v51 = vsub.f32 %v470_v38, %v477_v50  ;;  %v1606_v38 = vpack.c.bf16 %v290_v36, %v289_v35 }
 0x402   : > { %v479_v52 = vmul.f32 1.442695, %v478_v51 }
 0x403   : > { %v640_v53 = vpop.xlane.xlu0 %639 }
 0x404   : > { %1692 = vpow2.f32 %v479_v52  ;;  %v641_v54 = vsub.f32 %v634_v41, %v640_v53  ;;  %v1609_v41 = vpack.c.bf16 %v292_v40, %v291_v39 }
 0x406   : > { %v642_v55 = vmul.f32 1.442695, %v641_v54 }
 0x408   : > { %1694 = vpow2.f32 %v642_v55  ;;  %v812_v56 = vpop.xlane.xlu1 %811 }
 0x409   : > { %v813_v57 = vsub.f32 %v806_v44, %v812_v56 }
 0x40b   : > { %v814_v58 = vmul.f32 1.442695, %v813_v57 }
 0x40c   : > { %v651_v7 = vpop.permute.xlu1 %650 }
 0x40d   : > { %1696 = vpow2.f32 %v814_v58 }
 0x40e   : > { %v1693_v59 = vpop.eup %1692 }
 0x40f   : > { %v481_v60 = vsel %vm474_vm3, %v1693_v59, 0.0 }
 0x410   : > { %482 = vadd.xlane.f32.xlu1 %v481_v60  ;;  %v983_v61 = vpop.xlane.xlu0 %982  ;;  %v1167_v60 = vld [vmem:[%s2155_s5 + $0x10] sm:$0xff] }
 0x411   : > { %v984_v62 = vsub.f32 %v977_v47, %v983_v61  ;;  %v1168_v61 = vld [vmem:[%s2155_s5 + $0x18] sm:$0xff] }
 0x412   : > { %v1695_v63 = vpop.eup %1694 }
 0x413   : > { %v985_v1 = vmul.f32 1.442695, %v984_v62  ;;  %v644_v2 = vsel %vm474_vm3, %v1695_v63, 0.0  ;;  %v1615_v62 = vpack.c.bf16 %v1168_v61, %v1167_v60 }
 0x414   : > { %645 = vadd.xlane.f32.xlu0 %v644_v2  ;;  %v1171_v2 = vld [vmem:[%s2156_s6 + $0x10] sm:$0xff] }
 0x415   : > { %1698 = vpow2.f32 %v985_v1  ;;  %v1170_v1 = vld [vmem:[%s2156_s6 + $0x8] sm:$0xff] }
 0x417   : > { %v1697_v3 = vpop.eup %1696 }
 0x418   : > { %v816_v4 = vsel %vm474_vm3, %v1697_v3, 0.0 }
 0x419   : > { %817 = vadd.xlane.f32.xlu1 %v816_v4  ;;  %v1172_v4 = vld [vmem:[%s2156_s6 + $0x18] sm:$0xff] }
 0x41f   : > { %v1699_v5 = vpop.eup %1698 }
 0x420   : > { %v987_v6 = vsel %vm474_vm3, %v1699_v5, 0.0 }
 0x421   : > { %988 = vadd.xlane.f32.xlu0 %v987_v6 }
 0x42a   : > { %992 = vrot.lane.b32.xlu1 %v1931_v30, %s1784_s16 }
 0x437   : > { %821 = vrot.lane.b32.xlu0 %v1931_v30, %s1782_s14  ;;  %v1785_v30 = vmov 0.0|0.0   ;;  %s1786_s14 = smov [#allocation3]  }
 0x438   : > { %1599 = vmatprep.subr.bf16.mxu0 %v1785_v30  ;;  %s1716_s16 = sshll.u32 %s1786_s14, 4  ;;  %s1717_s16 = int_to_ptr.vmem [resolvable:$false] %s1716_s16 }
 0x439   : > { %1601 = vmatpush3.bf16.msra.mxu0 %v1600_v27  ;;  %v1182_v27 = vld [vmem:[%s2156_s6 + $0x68] sm:$0xff]  ;;  %s1718_s17 = scalar_lea.vmem %s1717_s16, 256 }
 0x43a   : > { %1602 = vmatprep.subr.bf16.mxu0 %v1785_v30  ;;  %v1636_v28 = vpack.c.bf16 %v1182_v27, %v1181_v25 }
 0x43d   : > { %1604 = vmatpush3.bf16.msra.mxu0 %v1603_v31  ;;  %v1184_v31 = vld [vmem:[%s2156_s6 + $0x78] sm:$0xff] }
 0x43e   : > { %1605 = vmatprep.subr.bf16.mxu0 %v1785_v30 }
 0x441   : > { %1607 = vmatpush3.bf16.msra.mxu0 %v1606_v38 }
 0x442   : > { %1608 = vmatprep.subr.bf16.mxu0 %v1785_v30 }
 0x445   : > { %1610 = vmatpush3.bf16.msra.mxu0 %v1609_v41 }
 0x446   : > { %1611 = vmatprep.subr.bf16.mxu0 %v1785_v30 }
 0x49d   : > { %v483_v8 = vpop.xlane.xlu1 %482 }
 0x49e   : > { %1700 = vrcp.f32 %v483_v8 }
 0x4a1   : > { %v646_v9 = vpop.xlane.xlu0 %645 }
 0x4a2   : > { %1702 = vrcp.f32 %v646_v9 }
 0x4a6   : > { %v818_v10 = vpop.xlane.xlu1 %817 }
 0x4a7   : > { %1704 = vrcp.f32 %v818_v10 }
 0x4a8   : > { %v1701_v11 = vpop.eup %1700 }
 0x4a9   : > { %v485_v12 = vmul.f32 %v1701_v11, %v1693_v59 }
 0x4aa   : > { %v993_v20 = vpop.permute.xlu1 %992 }
 0x4ab   : > { %1494 = vmatmul.mubr.msk.f32.vlgmr.msra.gmra.mrb[0].mxu1 %vm474_vm3, %v485_v12 }
 0x4ac   : > { %v1703_v13 = vpop.eup %1702  ;;  %1502 = vmatpush3.msra.mxu1 %v651_v7  ;;  %1503 = vmatprep.mubr.msk.f32.mxu1 %vm1777_vm1, %v1776_v14 }
 0x4ad   : > { %v648_v15 = vmul.f32 %v1703_v13, %v1695_v63  ;;  %1511 = vmatprep.subr.mxu1 %v1776_v14  ;;  %v1169_v63 = vld [vmem:[%s2156_s6] sm:$0xff] }
 0x4ae   : > { %v989_v16 = vpop.xlane.xlu0 %988  ;;  %v1173_v13 = vld [vmem:[%s2156_s6 + $0x20] sm:$0xff] }
 0x4af   : > { %1706 = vrcp.f32 %v989_v16  ;;  %1504 = vmatmul.mubr.msk.f32.vlgmr.msra.gmra.mrb[2].mxu1 %vm474_vm3, %v648_v15  ;;  %v1174_v15 = vld [vmem:[%s2156_s6 + $0x28] sm:$0xff] }
 0x4b0   : > { %1513 = vmatprep.mubr.msk.f32.mxu1 %vm1777_vm1, %v1776_v14  ;;  %v1624_v16 = vpack.c.bf16 %v1174_v15, %v1173_v13 }
 0x4b1   : > { %v1705_v17 = vpop.eup %1704 }
 0x4b2   : > { %v820_v18 = vmul.f32 %v1705_v17, %v1697_v3  ;;  %v822_v19 = vpop.permute.xlu0 %821  ;;  %v1618_v3 = vpack.c.bf16 %v1170_v1, %v1169_v63 }
 0x4b3   : > { %1512 = vmatpush3.msra.mxu1 %v822_v19  ;;  %v1178_v19 = vld [vmem:[%s2156_s6 + $0x48] sm:$0xff] }
 0x4b4   : > { %1514 = vmatmul.mubr.msk.f32.vlgmr.msra.gmra.mrb[4].mxu1 %vm474_vm3, %v820_v18  ;;  %1521 = vmatprep.subr.mxu1 %v1776_v14  ;;  %v1177_v18 = vld [vmem:[%s2156_s6 + $0x40] sm:$0xff] }
 0x4b5   : > { %1522 = vmatpush3.msra.mxu1 %v993_v20  ;;  %1523 = vmatprep.mubr.msk.f32.mxu1 %vm1777_vm1, %v1776_v14  ;;  %v1630_v20 = vpack.c.bf16 %v1178_v19, %v1177_v18 }
 0x4b6   : > { %1617 = vmatprep.subr.bf16.mxu1 %v1785_v30 }
 0x4b9   : > { %v1707_v21 = vpop.eup %1706 }
 0x4ba   : > { %v991_v22 = vmul.f32 %v1707_v21, %v1699_v5  ;;  %v1621_v5 = vpack.c.bf16 %v1172_v4, %v1171_v2  ;;  %v1179_v21 = vld [vmem:[%s2156_s6 + $0x50] sm:$0xff] }
 0x4bc   : > { %1524 = vmatmul.mubr.msk.f32.vlgmr.msra.gmra.mrb[6].mxu1 %vm474_vm3, %v991_v22  ;;  %v1180_v22 = vld [vmem:[%s2156_s6 + $0x58] sm:$0xff] }
 0x4bd   : > { %1588 = vmatprep.mubr.msk.f32.mxu1 %vm1777_vm1, %v1776_v14  ;;  %1619 = vmatpush3.bf16.msra.mxu1 %v1618_v3  ;;  %v1633_v23 = vpack.c.bf16 %v1180_v22, %v1179_v21 }
 0x4be   : > { %1620 = vmatprep.subr.bf16.mxu1 %v1785_v30 }
 0x4c1   : > { %1622 = vmatpush3.bf16.msra.mxu1 %v1621_v5 }
 0x4c2   : > { %1623 = vmatprep.subr.bf16.mxu1 %v1785_v30 }
 0x4c5   : > { %1625 = vmatpush3.bf16.msra.mxu1 %v1624_v16 }
 0x4c6   : > { %1626 = vmatprep.subr.bf16.mxu1 %v1785_v30 }
 0x57e   : > { %v555_v32 = vpop.f32.mrb[0].mxu1 }
 0x57f   : > { %559 = vst.msk [vmem:[#allocation2] sm:$0xff] %vm399_vm2, %v555_v32  ;;  %v1495_v33 = vpop.f32.mrb[1].mxu1  ;;  %v1639_v32 = vpack.c.bf16 %v1184_v31, %v1183_v29 }
 0x582   : > { %v722_v34 = vpop.f32.mrb[2].mxu1 }
 0x583   : > { %727 = vrot.lane.b32.xlu1 %v722_v34, %s1783_s15  ;;  %v1505_v37 = vpop.f32.mrb[3].mxu1 }
 0x587   : > { %v893_v42 = vpop.f32.mrb[4].mxu1 }
 0x588   : > { %898 = vrot.lane.b32.xlu0 %v893_v42, %s1781_s13  ;;  %v1515_v43 = vpop.f32.mrb[5].mxu1  ;;  %s269_s13 = scalar_lea.vmem [#allocation3], %s1416_s21 }
 0x589   : > { %s1353_s15 = sshll.u32 %s269_s13, 4  ;;  %s2109_s15 = int_to_ptr.vmem [resolvable:$true] %s1353_s15 }
 0x58a   : > { %p1719_p0 = scmp.lt.s32.totalorder %s2109_s15, %s1717_s16 }
 0x58f   : > { %v1064_v44 = vpop.f32.mrb[6].mxu1 }
 0x590   : > { %1069 = vrot.lane.b32.xlu1 %v1064_v44, %s1780_s9  ;;  %v1525_v45 = vpop.f32.mrb[7].mxu1  ;;  %s1436_s9 = sshll.u32 %s1848_s28, 7  ;;  %s1712_s28 = scalar_lea.vmem %s2109_s15, 128 }
 0x591   : > { %s2107_s29 = scalar_lea.hbm %s2157_s7, %s1436_s9  ;;  %p1713_p11 = scmp.ne.s32.totalorder %s2109_s15, %s1712_s28 }
 0x592   : > { %p1720_p1 = scmp.lt.s32.totalorder %s1718_s17, %s1712_s28 }
 0x593   : > { %p1714_p12 = pnand %p1713_p11, %p1865_p5 }
 0x594   : > { %p1721_p2 = por %p1720_p1, %p1719_p0 }
 0x595   : > { %p1715_p13 = pneg %p1714_p12 }
 0x597   : > { %p1722_p3 = pnand %p1721_p2, %p1715_p13 }
 0x5f5   : > { %v728_v46 = vpop.permute.xlu1 %727 }
 0x5f6   : > { %731 = vst.msk [vmem:[#allocation2] sm:$0xff] %vm730_vm4, %v728_v46 }
 0x5fa   : > { %v899_v47 = vpop.permute.xlu0 %898 }
 0x5fb   : > { %902 = vst.msk [vmem:[#allocation2] sm:$0xff] %vm901_vm5, %v899_v47 }
 0x602   : > { %v1070_v48 = vpop.permute.xlu1 %1069 }
 0x603   : > { %1073 = vst.msk [vmem:[#allocation2] sm:$0xff] %vm1072_vm6, %v1070_v48 }
 0x60a   : > { %v1074_v49 = vld [vmem:[#allocation2] sm:$0xff] }
 0x60b   : > { %1543 = vmatmul.mubr.msk.f32.vlgmr.msra.gmra.mrb[10].mxu0 %vm1075_vm7, %v1074_v49 }
 0x60c   : > { %1553 = vmatprep.mubr.msk.f32.mxu0 %vm1777_vm1, %v1776_v14  ;;  %v1165_v14 = vld [vmem:[%s2155_s5] sm:$0xff] }
 0x6de   : > { %v1145_v50 = vpop.f32.mrb[10].mxu0 }
 0x6df   : > { %v2024_v51 = vadd.f32 %v1145_v50, %v1880_v0  ;;  %v1544_v52 = vpop.f32.mrb[11].mxu0  ;;  %v1166_v0 = vld [vmem:[%s2155_s5 + $0x8] sm:$0xff] }
 0x6e0   : > { %v1612_v59 = vpack.c.bf16 %v1166_v0, %v1165_v14 }
 0x6e1   : > { %v1150_v53 = vsel %vm293_vm0, %v2024_v51, 0.0 }
 0x6e2   : > { %1151 = vadd.xlane.f32.xlu0 %v1150_v53  ;;  %1613 = vmatpush3.bf16.msra.mxu0 %v1612_v59 }
 0x6e3   : > { %1614 = vmatprep.subr.bf16.mxu0 %v1785_v30 }
 0x6e6   : > { %1616 = vmatpush3.bf16.msra.mxu0 %v1615_v62 }
 0x76f   : > { %v1152_v54 = vpop.xlane.xlu0 %1151 }
 0x770   : > { %v1153_v55 = vmul.f32 0.03125, %v1152_v54 }
 0x772   : > { %v1154_v56 = vsub.f32 %v2024_v51, %v1153_v55 }
 0x774   : > { %v1155_v57 = vmul.f32 %v1154_v56, %v1154_v56 }
 0x776   : > { %v1156_v58 = vsel %vm293_vm0, %v1155_v57, 0.0 }
 0x777   : > { %1157 = vadd.xlane.f32.xlu1 %v1156_v58 }
 0x804   : > { %v1158_v6 = vpop.xlane.xlu1 %1157 }
 0x805   : > { %v1159_v7 = vmul.f32 0.03125, %v1158_v6 }
 0x807   : > { %v1160_v8 = vadd.f32 1e-05, %v1159_v7 }
 0x809   : > { %1708 = vrsqrt.f32 %v1160_v8 }
 0x813   : > { %v1709_v9 = vpop.eup %1708 }
 0x814   : > { %v1162_v10 = vmul.f32 %v1709_v9, %v1154_v56 }
 0x816   : > { %v1163_v11 = vmul.f32 %v1916_v24, %v1162_v10  ;;  %v1175_v24 = vld [vmem:[%s2156_s6 + $0x30] sm:$0xff] }
 0x818   : > { %v1164_v12 = vadd.f32 %v1921_v26, %v1163_v11  ;;  %v1176_v26 = vld [vmem:[%s2156_s6 + $0x38] sm:$0xff] }
 0x819   : > { %v1627_v17 = vpack.c.bf16 %v1176_v26, %v1175_v24 }
 0x81a   : > { %1554 = vmatmul.mubr.msk.f32.vlgmr.msra.gmra.mrb[12].mxu0 %vm293_vm0, %v1164_v12 }
 0x81b   : > { %1628 = vmatpush3.bf16.msra.mxu1 %v1627_v17 }
 0x81c   : > { %1629 = vmatprep.subr.bf16.mxu1 %v1785_v30 }
 0x81f   : > { %1631 = vmatpush3.bf16.msra.mxu1 %v1630_v20 }
 0x820   : > { %1632 = vmatprep.subr.bf16.mxu1 %v1785_v30 }
 0x823   : > { %1634 = vmatpush3.bf16.msra.mxu1 %v1633_v23 }
 0x824   : > { %1635 = vmatprep.subr.bf16.mxu1 %v1785_v30 }
 0x827   : > { %1637 = vmatpush3.bf16.msra.mxu1 %v1636_v28 }
 0x828   : > { %1638 = vmatprep.subr.bf16.mxu1 %v1785_v30 }
 0x82b   : > { %1640 = vmatpush3.bf16.msra.mxu1 %v1639_v32 }
 0x8ed   : > { %v1254_v33 = vpop.f32.mrb[12].mxu0 }
 0x8ee   : > { %v1259_v34 = vmul.f32 %v1254_v33, %v1254_v33  ;;  %v1555_v35 = vpop.f32.mrb[13].mxu0  ;;  %v1258_v41 = vmul.f32 0.5, %v1254_v33 }
 0x8f0   : > { %v1260_v36 = vmul.f32 %v1259_v34, %v1254_v33 }
 0x8f2   : > { %v1261_v37 = vmul.f32 0.044715, %v1260_v36 }
 0x8f4   : > { %v1262_v38 = vadd.f32 %v1261_v37, %v1254_v33 }
 0x8f6   : > { %v1263_v39 = vmul.f32 0.7978846, %v1262_v38 }
 0x8f8   : > { %1710 = vtanh.f32 %v1263_v39 }
 0x902   : > { %v1711_v40 = vpop.eup %1710 }
 0x903   : > { %v1265_v42 = vadd.f32 1.0, %v1711_v40 }
 0x905   : > { %v1266_v43 = vmul.f32 %v1265_v42, %v1258_v41 }
 0x907   : > { %1589 = vmatmul.mubr.f32.vlgmr.msra.gmra.mrb[8].mxu1 %v1266_v43 }
 0x9da   : > { %v1333_v30 = vpop.f32.mrb[8].mxu1 }
 0x9db   : > { %v1337_v44 = vadd.f32 %v1333_v30, %v2024_v51  ;;  %v1590_v45 = vpop.f32.mrb[9].mxu1 }
 0x9dd   : > { %1338 = vst.msk [vmem:[%s269_s13] sm:$0xff] %vm293_vm0, %v1337_v44 }
 0x9de   : > { %1725 = shalt.err (!%p1722_p3)
}
 0x9df   : > { %s1726_s18 = scalar_lea.hbm %s2107_s29, 128  ;;  %s1730_s21 = scalar_lea.hbm %s2157_s7, 256 }
 0x9e0   : > { %p1727_p4 = scmp.ne.s32.totalorder %s2107_s29, %s1726_s18  ;;  %p1731_p9 = scmp.lt.u32.totalorder %s2107_s29, %s2157_s7 }
 0x9e1   : > { %p1732_p10 = scmp.lt.u32.totalorder %s1730_s21, %s1726_s18  ;;  %p1734_p12 = scmp.lt.u32.totalorder %s1726_s18, %s2107_s29 }
 0x9e2   : > { %p1728_p7 = pnand %p1727_p4, %p1865_p5 }
 0x9e3   : > { %p1733_p11 = por %p1732_p10, %p1731_p9 }
 0x9e4   : > { %p1729_p8 = pneg %p1728_p7 }
 0x9e5   : > { %p1735_p13 = por %p1734_p12, %p1733_p11 }
 0x9e7   : > { %p1736_p0 = pnand %p1735_p13, %p1729_p8 }
 0x9e9   : > { %1739 = shalt.err (!%p1736_p0)
}
 0x9ea   : > { %1641 = dma.vmem_to_hbm [thread:$0]  (%p1865_p5), %s2109_s15, 128, %s2107_s29, %s1340_s8  }
 0x9eb PF: > { %p1647_p1 = scmp.ge.s32.totalorder %s1774_s27, 2  ;;  %s1365_s22 = sand.u32 1, %s1762_s24  }
 0x9ec   : > { %s1366_s23 = scalar_lea.sflag [#allocation4], %s1365_s22 }
 0x9ed   : > { %p1644_p2 = pnand %p1647_p1, %p1869_p6 }
 0x9ef   : > { %1757 = dma.done.wait (!%p1644_p2), %s1366_s23, 128  }
 0x9f0   : > { %1759 = vsyncadd (!%p1644_p2), %s1366_s23, 4294967168  ;;  %p17_p3 = scmp.ge.s32.totalorder %s1852_s30, 4   ;;  %s2160_s24 = smov %s1766_s25 }
 0x9f1   : > { %s2161_s25 = smov %s1770_s26  ;;  %s2162_s26 = smov %s1863_s10 }
 0x9f2   : > { %s2163_s27 = smov %s1852_s30  ;;  %19 = sbr.rel (!%p17_p3) target bundleno = 3 (0x3), region = 83 }
 0x9f9   :  { %1371 = vsyncpa [#allocation4], 1 }
 0x9fa   :  { %1373 = vsyncpa [#allocation4 + $0x1], 1 }

</bundles_post_ra>
